<compile_context>
chip_gen: v5e
topology: v5e:2x2
jax: 0.10.0
libtpu: 0.0.40
codegen_flags: <defaults>
</compile_context>

<pallas_src>
import functools

import jax
import jax.numpy as jnp
from jax.experimental import pallas as pl
from jax.experimental.pallas import tpu as pltpu

INP_DIM = 28 * 28      # 784 (multiple of 8; full-extent last dim is lane-legal)
HIDDEN_DIM = 128
NUM_CLASSES = 10
OUT_PAD = 128          # lane-dense output; sliced back to 10 in the wrapper
NUM_LAYERS = 4
TM_MAX = 2048          # batch rows per grid step (cap; fits v7x 64 MiB VMEM w/ headroom)


def _round_up(n, m):
    return ((n + m - 1) // m) * m


def mlp_kernel(x_ref,
               w0_ref, b0_ref,
               w1_ref, b1_ref,
               w2_ref, b2_ref,
               w3_ref, b3_ref,
               out_ref):
    """One (tm, 784) batch tile of the 4-layer MLP, fully fused.

    Weights/biases are VMEM-resident across grid steps.  Matmuls take bf16 inputs on
    the MXU with f32 accumulation; bias add and ReLU run in f32 on the VPU.
    """
    # In-kernel cast of the input tile (f32 or bf16 caller dtype) to bf16 for the MXU.
    x = x_ref[...].astype(jnp.bfloat16)
    h = jnp.dot(x, w0_ref[...], preferred_element_type=jnp.float32)
    h = jnp.maximum(h + b0_ref[...], 0.0)
    h = jnp.dot(h.astype(jnp.bfloat16), w1_ref[...], preferred_element_type=jnp.float32)
    h = jnp.maximum(h + b1_ref[...], 0.0)
    h = jnp.dot(h.astype(jnp.bfloat16), w2_ref[...], preferred_element_type=jnp.float32)
    h = jnp.maximum(h + b2_ref[...], 0.0)
    h = jnp.dot(h.astype(jnp.bfloat16), w3_ref[...], preferred_element_type=jnp.float32)
    out_ref[...] = (h + b3_ref[...]).astype(out_ref.dtype)   # no ReLU after last layer


def prepare_params(params):
    """One-time parameter glue (do at init, NOT per forward call).

    torch-layout W (out, in) -> (in, out) bf16; last layer N padded 10 -> 128 with zero
    columns.  Biases become f32 (1, out); last one zero-padded to (1, 128).
    """
    prepped = []
    for layer_idx, (W, b) in enumerate(params):
        Wt = W.T.astype(jnp.float32)                      # (in, out)
        bb = b.reshape(1, -1).astype(jnp.float32)
        if layer_idx == NUM_LAYERS - 1:
            Wt = jnp.pad(Wt, ((0, 0), (0, OUT_PAD - NUM_CLASSES)))
            bb = jnp.pad(bb, ((0, 0), (0, OUT_PAD - NUM_CLASSES)))
        prepped.append(Wt.astype(jnp.bfloat16))
        prepped.append(bb)
    return tuple(prepped)


@functools.partial(jax.jit, static_argnames=("tm_max",))
def mlp_forward(x_nchw, prepped_params, tm_max=TM_MAX):
    """x_nchw: (B, 1, 28, 28), f32 (bf16 also accepted and halves the input stream).
    prepped_params: output of prepare_params.  Returns logits (B, NUM_CLASSES) bf16."""
    B = x_nchw.shape[0]
    # nn.Flatten(): free contiguous reshape, fed directly to the kernel (no pad/cast
    # prologue writing an intermediate array to HBM).
    x_flat = x_nchw.reshape(B, INP_DIM)

    # Adaptive tile: don't pad small batches up to a huge tile; keep tm a multiple of
    # 16 for bf16 sublane packing.  (On v7x, batches > tm give >= 2 grid steps so both
    # TensorCores are used via the "parallel" batch axis.)
    tm = min(tm_max, _round_up(B, 16))
    b_pad = pl.cdiv(B, tm) * tm
    if b_pad != B:
        x_flat = jnp.pad(x_flat, ((0, b_pad - B), (0, 0)))

    # Weights/biases: full-array blocks, same block index every grid step -> resident.
    def resident(shape):
        return pl.BlockSpec(shape, lambda i: (0, 0))

    w_shapes = [(INP_DIM, HIDDEN_DIM), (HIDDEN_DIM, HIDDEN_DIM),
                (HIDDEN_DIM, HIDDEN_DIM), (HIDDEN_DIM, OUT_PAD)]
    b_shapes = [(1, HIDDEN_DIM), (1, HIDDEN_DIM), (1, HIDDEN_DIM), (1, OUT_PAD)]
    wb_specs = []
    for ws, bs in zip(w_shapes, b_shapes):
        wb_specs.append(resident(ws))
        wb_specs.append(resident(bs))

    out_padded = pl.pallas_call(
        mlp_kernel,
        out_shape=jax.ShapeDtypeStruct((b_pad, OUT_PAD), jnp.bfloat16),
        grid=(b_pad // tm,),
        in_specs=[pl.BlockSpec((tm, INP_DIM), lambda i: (i, 0))] + wb_specs,
        out_specs=pl.BlockSpec((tm, OUT_PAD), lambda i: (i, 0)),
        compiler_params=pltpu.CompilerParams(
            dimension_semantics=("parallel",),      # shard batch axis across TCs (v7x)
            vmem_limit_bytes=40 * 1024 * 1024,      # headroom vs v7x's 64 MiB/TC VMEM
        ),
    )(x_flat, *prepped_params)

    return out_padded[:B, :NUM_CLASSES]


def init_params(key):
    """Deterministic init matching nn.Linear shapes: W (out, in), b (out,)."""
    dims = []
    for layer_idx in range(NUM_LAYERS):
        if layer_idx == 0:
            dims.append((INP_DIM, HIDDEN_DIM))
        elif layer_idx == NUM_LAYERS - 1:
            dims.append((HIDDEN_DIM, NUM_CLASSES))
        else:
            dims.append((HIDDEN_DIM, HIDDEN_DIM))
    params = []
    for (d_in, d_out) in dims:
        key, kw, kb = jax.random.split(key, 3)
        bound = 1.0 / (d_in ** 0.5)                     # torch.nn.Linear default range
        W = jax.random.uniform(kw, (d_out, d_in), jnp.float32, -bound, bound)
        b = jax.random.uniform(kb, (d_out,), jnp.float32, -bound, bound)
        params.append((W, b))
    return params


def mlp_reference(x_nchw, params):
    """Pure-JAX f32 reference (matches the PyTorch forward default path)."""
    h = x_nchw.reshape(x_nchw.shape[0], -1)
    for layer_idx, (W, b) in enumerate(params):
        h = h @ W.T + b
        if layer_idx != NUM_LAYERS - 1:
            h = jnp.maximum(h, 0.0)
    return h


# TODO(synk): output_hidden_states / return_dict flags of the PyTorch forward are not
# implemented; only the default logits path is.

if __name__ == "__main__":
    key = jax.random.PRNGKey(0)
    key, kx = jax.random.split(key)
    # Small MNIST-like batch: (B=8, C=1, H=28, W=28), NCHW.
    x = jax.random.normal(kx, (8, 1, 28, 28), jnp.float32)
    params = init_params(key)
    prepped = prepare_params(params)                    # one-time glue, outside forward

    logits = mlp_forward(x, prepped)
    logits = jax.block_until_ready(logits)

    ref = mlp_reference(x, params)
    assert logits.shape == (8, NUM_CLASSES)
    # bf16 MXU inputs + bf16 logits with f32 accumulation -> loosened tolerance.
    assert jnp.allclose(logits.astype(jnp.float32), ref, atol=5e-2, rtol=5e-2), \
        "mismatch vs JAX reference"
    print("KERNEL_OK")
</pallas_src>

<mosaic_0001>
module attributes {stable_mosaic.version = 11 : i64} {
  func.func @mlp_kernel(%arg0: i32, %arg1: memref<16x784xf32, #tpu.memory_space<vmem>>, %arg2: memref<784x128xbf16, #tpu.memory_space<vmem>>, %arg3: memref<1x128xf32, #tpu.memory_space<vmem>>, %arg4: memref<128x128xbf16, #tpu.memory_space<vmem>>, %arg5: memref<1x128xf32, #tpu.memory_space<vmem>>, %arg6: memref<128x128xbf16, #tpu.memory_space<vmem>>, %arg7: memref<1x128xf32, #tpu.memory_space<vmem>>, %arg8: memref<128x128xbf16, #tpu.memory_space<vmem>>, %arg9: memref<1x128xf32, #tpu.memory_space<vmem>>, %arg10: memref<16x128xbf16, #tpu.memory_space<vmem>>) attributes {dimension_semantics = [#tpu.dimension_semantics<parallel>], iteration_bounds = array<i64: 1>, scalar_prefetch = 0 : i64, scratch_operands = 0 : i64, tpu.core_type = #tpu.core_type<tc>, window_params = [{transform_indices = @transform_0, window_bounds = array<i64: 16, 784>}, {pipeline_mode = #tpu.pipeline_mode<synchronous>, transform_indices = @transform_1, window_bounds = array<i64: 784, 128>}, {pipeline_mode = #tpu.pipeline_mode<synchronous>, transform_indices = @transform_2, window_bounds = array<i64: 1, 128>}, {pipeline_mode = #tpu.pipeline_mode<synchronous>, transform_indices = @transform_3, window_bounds = array<i64: 128, 128>}, {pipeline_mode = #tpu.pipeline_mode<synchronous>, transform_indices = @transform_4, window_bounds = array<i64: 1, 128>}, {pipeline_mode = #tpu.pipeline_mode<synchronous>, transform_indices = @transform_5, window_bounds = array<i64: 128, 128>}, {pipeline_mode = #tpu.pipeline_mode<synchronous>, transform_indices = @transform_6, window_bounds = array<i64: 1, 128>}, {pipeline_mode = #tpu.pipeline_mode<synchronous>, transform_indices = @transform_7, window_bounds = array<i64: 128, 128>}, {pipeline_mode = #tpu.pipeline_mode<synchronous>, transform_indices = @transform_8, window_bounds = array<i64: 1, 128>}, {transform_indices = @transform_9, window_bounds = array<i64: 16, 128>}]} {
    %c0 = arith.constant 0 : index
    %c0_0 = arith.constant 0 : index
    %0 = vector.load %arg1[%c0, %c0_0] : memref<16x784xf32, #tpu.memory_space<vmem>>, vector<16x784xf32>
    %1 = arith.truncf %0 : vector<16x784xf32> to vector<16x784xbf16>
    %c0_1 = arith.constant 0 : index
    %c0_2 = arith.constant 0 : index
    %2 = vector.load %arg2[%c0_1, %c0_2] : memref<784x128xbf16, #tpu.memory_space<vmem>>, vector<784x128xbf16>
    %cst = arith.constant dense<0.000000e+00> : vector<16x128xf32>
    %3 = tpu.matmul %1, %2, %cst {dimension_numbers = #tpu.dot_dimension_numbers<[1], [0], [0], [1], [0, 0, 1, 1], [], []>} : vector<16x784xbf16>, vector<784x128xbf16>, vector<16x128xf32> -> vector<16x128xf32>
    %c0_3 = arith.constant 0 : index
    %c0_4 = arith.constant 0 : index
    %4 = vector.load %arg3[%c0_3, %c0_4] : memref<1x128xf32, #tpu.memory_space<vmem>>, vector<1x128xf32>
    %5 = vector.broadcast %4 : vector<1x128xf32> to vector<16x128xf32>
    %6 = arith.addf %3, %5 : vector<16x128xf32>
    %cst_5 = arith.constant 0.000000e+00 : f32
    %7 = vector.broadcast %cst_5 : f32 to vector<16x128xf32>
    %8 = arith.maximumf %6, %7 : vector<16x128xf32>
    %9 = arith.truncf %8 : vector<16x128xf32> to vector<16x128xbf16>
    %c0_6 = arith.constant 0 : index
    %c0_7 = arith.constant 0 : index
    %10 = vector.load %arg4[%c0_6, %c0_7] : memref<128x128xbf16, #tpu.memory_space<vmem>>, vector<128x128xbf16>
    %cst_8 = arith.constant dense<0.000000e+00> : vector<16x128xf32>
    %11 = tpu.matmul %9, %10, %cst_8 {dimension_numbers = #tpu.dot_dimension_numbers<[1], [0], [0], [1], [0, 0, 1, 1], [], []>} : vector<16x128xbf16>, vector<128x128xbf16>, vector<16x128xf32> -> vector<16x128xf32>
    %c0_9 = arith.constant 0 : index
    %c0_10 = arith.constant 0 : index
    %12 = vector.load %arg5[%c0_9, %c0_10] : memref<1x128xf32, #tpu.memory_space<vmem>>, vector<1x128xf32>
    %13 = vector.broadcast %12 : vector<1x128xf32> to vector<16x128xf32>
    %14 = arith.addf %11, %13 : vector<16x128xf32>
    %cst_11 = arith.constant 0.000000e+00 : f32
    %15 = vector.broadcast %cst_11 : f32 to vector<16x128xf32>
    %16 = arith.maximumf %14, %15 : vector<16x128xf32>
    %17 = arith.truncf %16 : vector<16x128xf32> to vector<16x128xbf16>
    %c0_12 = arith.constant 0 : index
    %c0_13 = arith.constant 0 : index
    %18 = vector.load %arg6[%c0_12, %c0_13] : memref<128x128xbf16, #tpu.memory_space<vmem>>, vector<128x128xbf16>
    %cst_14 = arith.constant dense<0.000000e+00> : vector<16x128xf32>
    %19 = tpu.matmul %17, %18, %cst_14 {dimension_numbers = #tpu.dot_dimension_numbers<[1], [0], [0], [1], [0, 0, 1, 1], [], []>} : vector<16x128xbf16>, vector<128x128xbf16>, vector<16x128xf32> -> vector<16x128xf32>
    %c0_15 = arith.constant 0 : index
    %c0_16 = arith.constant 0 : index
    %20 = vector.load %arg7[%c0_15, %c0_16] : memref<1x128xf32, #tpu.memory_space<vmem>>, vector<1x128xf32>
    %21 = vector.broadcast %20 : vector<1x128xf32> to vector<16x128xf32>
    %22 = arith.addf %19, %21 : vector<16x128xf32>
    %cst_17 = arith.constant 0.000000e+00 : f32
    %23 = vector.broadcast %cst_17 : f32 to vector<16x128xf32>
    %24 = arith.maximumf %22, %23 : vector<16x128xf32>
    %25 = arith.truncf %24 : vector<16x128xf32> to vector<16x128xbf16>
    %c0_18 = arith.constant 0 : index
    %c0_19 = arith.constant 0 : index
    %26 = vector.load %arg8[%c0_18, %c0_19] : memref<128x128xbf16, #tpu.memory_space<vmem>>, vector<128x128xbf16>
    %cst_20 = arith.constant dense<0.000000e+00> : vector<16x128xf32>
    %27 = tpu.matmul %25, %26, %cst_20 {dimension_numbers = #tpu.dot_dimension_numbers<[1], [0], [0], [1], [0, 0, 1, 1], [], []>} : vector<16x128xbf16>, vector<128x128xbf16>, vector<16x128xf32> -> vector<16x128xf32>
    %c0_21 = arith.constant 0 : index
    %c0_22 = arith.constant 0 : index
    %28 = vector.load %arg9[%c0_21, %c0_22] : memref<1x128xf32, #tpu.memory_space<vmem>>, vector<1x128xf32>
    %29 = vector.broadcast %28 : vector<1x128xf32> to vector<16x128xf32>
    %30 = arith.addf %27, %29 : vector<16x128xf32>
    %31 = arith.truncf %30 : vector<16x128xf32> to vector<16x128xbf16>
    %c0_23 = arith.constant 0 : index
    %c0_24 = arith.constant 0 : index
    %32 = vector.load %arg10[%c0_23, %c0_24] : memref<16x128xbf16, #tpu.memory_space<vmem>>, vector<16x128xbf16>
    tpu.vector_store %arg10[%c0_23, %c0_24], %31 {strides = array<i32>} : memref<16x128xbf16, #tpu.memory_space<vmem>>, vector<16x128xbf16>,
    return
  }
  func.func @transform_0(%arg0: i32) -> (i32, i32) {
    %c0_i32 = arith.constant 0 : i32
    %c0_i32_0 = arith.constant 0 : i32
    return %arg0, %c0_i32 : i32, i32
  }
  func.func @transform_1(%arg0: i32) -> (i32, i32) {
    %c0_i32 = arith.constant 0 : i32
    %c0_i32_0 = arith.constant 0 : i32
    %c0_i32_1 = arith.constant 0 : i32
    return %c0_i32, %c0_i32_0 : i32, i32
  }
  func.func @transform_2(%arg0: i32) -> (i32, i32) {
    %c0_i32 = arith.constant 0 : i32
    %c0_i32_0 = arith.constant 0 : i32
    %c0_i32_1 = arith.constant 0 : i32
    return %c0_i32, %c0_i32_0 : i32, i32
  }
  func.func @transform_3(%arg0: i32) -> (i32, i32) {
    %c0_i32 = arith.constant 0 : i32
    %c0_i32_0 = arith.constant 0 : i32
    %c0_i32_1 = arith.constant 0 : i32
    return %c0_i32, %c0_i32_0 : i32, i32
  }
  func.func @transform_4(%arg0: i32) -> (i32, i32) {
    %c0_i32 = arith.constant 0 : i32
    %c0_i32_0 = arith.constant 0 : i32
    %c0_i32_1 = arith.constant 0 : i32
    return %c0_i32, %c0_i32_0 : i32, i32
  }
  func.func @transform_5(%arg0: i32) -> (i32, i32) {
    %c0_i32 = arith.constant 0 : i32
    %c0_i32_0 = arith.constant 0 : i32
    %c0_i32_1 = arith.constant 0 : i32
    return %c0_i32, %c0_i32_0 : i32, i32
  }
  func.func @transform_6(%arg0: i32) -> (i32, i32) {
    %c0_i32 = arith.constant 0 : i32
    %c0_i32_0 = arith.constant 0 : i32
    %c0_i32_1 = arith.constant 0 : i32
    return %c0_i32, %c0_i32_0 : i32, i32
  }
  func.func @transform_7(%arg0: i32) -> (i32, i32) {
    %c0_i32 = arith.constant 0 : i32
    %c0_i32_0 = arith.constant 0 : i32
    %c0_i32_1 = arith.constant 0 : i32
    return %c0_i32, %c0_i32_0 : i32, i32
  }
  func.func @transform_8(%arg0: i32) -> (i32, i32) {
    %c0_i32 = arith.constant 0 : i32
    %c0_i32_0 = arith.constant 0 : i32
    %c0_i32_1 = arith.constant 0 : i32
    return %c0_i32, %c0_i32_0 : i32, i32
  }
  func.func @transform_9(%arg0: i32) -> (i32, i32) {
    %c0_i32 = arith.constant 0 : i32
    %c0_i32_0 = arith.constant 0 : i32
    return %arg0, %c0_i32 : i32, i32
  }
}

</mosaic_0001>

<bundles_post_ra>
// kernel: mlp_forward.1
= control target key start
LH: loop header
LB: loop body
LE: loop exit
PB: predicated region body
PF: predicated region fallthrough
CT: control target
= control target key end

     0   :  { %vm450_vm0 = vcmask 130048   ;;  %s1516_s1 = inlined_call_operand.vmem [shape: bf16[784,128], index: 1, kind: input, shape index: {}]   ;;  %s1517_s2 = inlined_call_operand.vmem [shape: f32[1,128], index: 2, kind: input, shape index: {}]   ;;  %s1518_s0 = inlined_call_operand.vmem [shape: f32[16,784], index: 0, kind: input, shape index: {}]   ;;  %s1519_s4 = inlined_call_operand.vmem [shape: f32[1,128], index: 4, kind: input, shape index: {}]   ;;  %s1520_s3 = inlined_call_operand.vmem [shape: bf16[128,128], index: 3, kind: input, shape index: {}]   ;;  %s1521_s5 = inlined_call_operand.vmem [shape: bf16[128,128], index: 5, kind: input, shape index: {}]   ;;  %s1522_s6 = inlined_call_operand.vmem [shape: f32[1,128], index: 6, kind: input, shape index: {}]   ;;  %s1523_s7 = inlined_call_operand.vmem [shape: bf16[128,128], index: 7, kind: input, shape index: {}]   ;;  %s1524_s8 = inlined_call_operand.vmem [shape: f32[1,128], index: 8, kind: input, shape index: {}]   ;;  %s1525_s9 = inlined_call_operand.vmem [shape: bf16[16,128], index: 9, kind: output, shape index: {}]  }
   0x1   :  { %v1115_v0 = vld [vmem:[%s1516_s1 + $0x38] sm:$0xff]  ;;  %v1114_v4 = vld [vmem:[%s1516_s1 + $0x30] sm:$0xff]  ;;  %v1113_v8 = vld [vmem:[%s1516_s1 + $0x28] sm:$0xff] }
   0x2   :  { %v1123_v1 = vld [vmem:[%s1516_s1 + $0x78] sm:$0xff]  ;;  %454 = vmatpush.bf16.msra.mxu0 %v1115_v0  ;;  %v1122_v5 = vld [vmem:[%s1516_s1 + $0x70] sm:$0xff]  ;;  %v1121_v9 = vld [vmem:[%s1516_s1 + $0x68] sm:$0xff] }
   0x3   :  { %v1131_v2 = vld [vmem:[%s1516_s1 + $0xb8] sm:$0xff]  ;;  %468 = vmatpush.bf16.msra.mxu1 %v1123_v1  ;;  %v1130_v6 = vld [vmem:[%s1516_s1 + $0xb0] sm:$0xff]  ;;  %v1129_v10 = vld [vmem:[%s1516_s1 + $0xa8] sm:$0xff] }
   0x4   :  { %v1139_v3 = vld [vmem:[%s1516_s1 + $0xf8] sm:$0xff]  ;;  %482 = vmatpush.bf16.msra.mxu2 %v1131_v2  ;;  %v1138_v7 = vld [vmem:[%s1516_s1 + $0xf0] sm:$0xff]  ;;  %v1137_v11 = vld [vmem:[%s1516_s1 + $0xe8] sm:$0xff] }
   0x5   :  { %496 = vmatpush.bf16.msra.mxu3 %v1139_v3  ;;  %v1112_v12 = vld [vmem:[%s1516_s1 + $0x20] sm:$0xff]  ;;  %v1111_v16 = vld [vmem:[%s1516_s1 + $0x18] sm:$0xff]  ;;  %v1110_v20 = vld [vmem:[%s1516_s1 + $0x10] sm:$0xff] }
   0x6   :  { %455 = vmatpush.bf16.msra.mxu0 %v1114_v4  ;;  %v1120_v13 = vld [vmem:[%s1516_s1 + $0x60] sm:$0xff]  ;;  %v1119_v17 = vld [vmem:[%s1516_s1 + $0x58] sm:$0xff]  ;;  %v1118_v21 = vld [vmem:[%s1516_s1 + $0x50] sm:$0xff] }
   0x7   :  { %469 = vmatpush.bf16.msra.mxu1 %v1122_v5  ;;  %v1128_v14 = vld [vmem:[%s1516_s1 + $0xa0] sm:$0xff]  ;;  %v1127_v18 = vld [vmem:[%s1516_s1 + $0x98] sm:$0xff]  ;;  %v1126_v22 = vld [vmem:[%s1516_s1 + $0x90] sm:$0xff] }
   0x8   :  { %483 = vmatpush.bf16.msra.mxu2 %v1130_v6  ;;  %v1136_v15 = vld [vmem:[%s1516_s1 + $0xe0] sm:$0xff]  ;;  %v1135_v19 = vld [vmem:[%s1516_s1 + $0xd8] sm:$0xff]  ;;  %v1134_v23 = vld [vmem:[%s1516_s1 + $0xd0] sm:$0xff] }
   0x9   :  { %497 = vmatpush.bf16.msra.mxu3 %v1138_v7  ;;  %v1109_v24 = vld [vmem:[%s1516_s1 + $0x8] sm:$0xff]  ;;  %v1108_v28 = vld [vmem:[%s1516_s1] sm:$0xff]  ;;  %v40_v31 = vld [vmem:[%s1518_s0 + $0x38] sm:$0xff] }
   0xa   :  { %456 = vmatpush.bf16.msra.mxu0 %v1113_v8  ;;  %v1117_v25 = vld [vmem:[%s1516_s1 + $0x48] sm:$0xff]  ;;  %v1116_v29 = vld [vmem:[%s1516_s1 + $0x40] sm:$0xff]  ;;  %v1147_v34 = vld [vmem:[%s1516_s1 + $0x138] sm:$0xff] }
   0xb   :  { %470 = vmatpush.bf16.msra.mxu1 %v1121_v9  ;;  %v1125_v26 = vld [vmem:[%s1516_s1 + $0x88] sm:$0xff]  ;;  %v33_v30 = vld [vmem:[%s1518_s0] sm:$0xff]  ;;  %v1155_v35 = vld [vmem:[%s1516_s1 + $0x178] sm:$0xff] }
   0xc   :  { %484 = vmatpush.bf16.msra.mxu2 %v1129_v10  ;;  %v1133_v27 = vld [vmem:[%s1516_s1 + $0xc8] sm:$0xff]  ;;  %v41_v33 = vld [vmem:[%s1518_s0 + $0x40] sm:$0xff]  ;;  %v35_v38 = vld [vmem:[%s1518_s0 + $0x10] sm:$0xff]  ;;  %v47_v40 = vpack.c.bf16 %v40_v31, %v33_v30 }
   0xd   :  { %498 = vmatpush.bf16.msra.mxu3 %v1137_v11  ;;  %v34_v32 = vld [vmem:[%s1518_s0 + $0x8] sm:$0xff]  ;;  %v1124_v36 = vld [vmem:[%s1516_s1 + $0x80] sm:$0xff]  ;;  %v36_v41 = vld [vmem:[%s1518_s0 + $0x18] sm:$0xff] }
   0xe   :  { %457 = vmatpush.bf16.msra.mxu0 %v1112_v12  ;;  %v1132_v37 = vld [vmem:[%s1516_s1 + $0xc0] sm:$0xff]  ;;  %v42_v39 = vld [vmem:[%s1518_s0 + $0x48] sm:$0xff]  ;;  %v43_v42 = vld [vmem:[%s1518_s0 + $0x50] sm:$0xff]  ;;  %v48_v43 = vpack.c.bf16 %v41_v33, %v34_v32 }
   0xf   :  { %471 = vmatpush.bf16.msra.mxu1 %v1120_v13  ;;  %v1156_v44 = vld [vmem:[%s1516_s1 + $0x180] sm:$0xff]  ;;  %v1146_v45 = vld [vmem:[%s1516_s1 + $0x130] sm:$0xff]  ;;  %v49_v47 = vpack.c.bf16 %v42_v39, %v35_v38  ;;  %v50_v48 = vpack.c.bf16 %v43_v42, %v36_v41  ;;  %v1145_v49 = vld [vmem:[%s1516_s1 + $0x128] sm:$0xff] }
  0x10   :  { %485 = vmatpush.bf16.msra.mxu2 %v1128_v14  ;;  %v1154_v46 = vld [vmem:[%s1516_s1 + $0x170] sm:$0xff]  ;;  %v1153_v50 = vld [vmem:[%s1516_s1 + $0x168] sm:$0xff]  ;;  %v1144_v51 = vld [vmem:[%s1516_s1 + $0x120] sm:$0xff] }
  0x11   :  { %499 = vmatpush.bf16.msra.mxu3 %v1136_v15  ;;  %v1152_v52 = vld [vmem:[%s1516_s1 + $0x160] sm:$0xff]  ;;  %v1143_v53 = vld [vmem:[%s1516_s1 + $0x118] sm:$0xff]  ;;  %v39_v55 = vld [vmem:[%s1518_s0 + $0x30] sm:$0xff] }
  0x12   :  { %458 = vmatpush.bf16.msra.mxu0 %v1111_v16  ;;  %v1151_v54 = vld [vmem:[%s1516_s1 + $0x158] sm:$0xff]  ;;  %v46_v56 = vld [vmem:[%s1518_s0 + $0x68] sm:$0xff]  ;;  %v1142_v57 = vld [vmem:[%s1516_s1 + $0x110] sm:$0xff] }
  0x13   :  { %472 = vmatpush.bf16.msra.mxu1 %v1119_v17  ;;  %v1150_v58 = vld [vmem:[%s1516_s1 + $0x150] sm:$0xff]  ;;  %v53_v59 = vpack.c.bf16 %v46_v56, %v39_v55  ;;  %v1141_v60 = vld [vmem:[%s1516_s1 + $0x108] sm:$0xff]  ;;  %v1140_v62 = vld [vmem:[%s1516_s1 + $0x100] sm:$0xff] }
  0x14   :  { %486 = vmatpush.bf16.msra.mxu2 %v1127_v18  ;;  %v1149_v61 = vld [vmem:[%s1516_s1 + $0x148] sm:$0xff]  ;;  %v1148_v63 = vld [vmem:[%s1516_s1 + $0x140] sm:$0xff]  ;;  %v44_v1 = vld [vmem:[%s1518_s0 + $0x58] sm:$0xff] }
  0x15   :  { %500 = vmatpush.bf16.msra.mxu3 %v1135_v19  ;;  %v37_v0 = vld [vmem:[%s1518_s0 + $0x20] sm:$0xff]  ;;  %v38_v2 = vld [vmem:[%s1518_s0 + $0x28] sm:$0xff]  ;;  %v1164_v6 = vld [vmem:[%s1520_s3 + $0x38] sm:$0xff] }
  0x16   :  { %459 = vmatpush.bf16.msra.mxu0 %v1110_v20  ;;  %v45_v3 = vld [vmem:[%s1518_s0 + $0x60] sm:$0xff]  ;;  %v51_v4 = vpack.c.bf16 %v44_v1, %v37_v0  ;;  %v1163_v7 = vld [vmem:[%s1520_s3 + $0x30] sm:$0xff]  ;;  %v1162_v8 = vld [vmem:[%s1520_s3 + $0x28] sm:$0xff] }
  0x17   :  { %473 = vmatpush.bf16.msra.mxu1 %v1118_v21  ;;  %v52_v5 = vpack.c.bf16 %v45_v3, %v38_v2  ;;  %v1161_v9 = vld [vmem:[%s1520_s3 + $0x20] sm:$0xff]  ;;  %v1160_v10 = vld [vmem:[%s1520_s3 + $0x18] sm:$0xff]  ;;  %v1159_v11 = vld [vmem:[%s1520_s3 + $0x10] sm:$0xff] }
  0x18   :  { %487 = vmatpush.bf16.msra.mxu2 %v1126_v22  ;;  %v1158_v12 = vld [vmem:[%s1520_s3 + $0x8] sm:$0xff]  ;;  %v1157_v16 = vld [vmem:[%s1520_s3] sm:$0xff]  ;;  %v1172_v18 = vld [vmem:[%s1521_s5 + $0x38] sm:$0xff] }
  0x19   :  { %501 = vmatpush.bf16.msra.mxu3 %v1134_v23  ;;  %v1186_v17 = vld [vmem:[%s1517_s2] ss:$0 sm:$0xff]  ;;  %v1171_v20 = vld [vmem:[%s1521_s5 + $0x30] sm:$0xff]  ;;  %v1178_v56 = vld [vmem:[%s1523_s7 + $0x28] sm:$0xff] }
  0x1a   :  { %460 = vmatpush.bf16.msra.mxu0 %v1109_v24  ;;  %v1179_v55 = vld [vmem:[%s1523_s7 + $0x30] sm:$0xff]  ;;  %v1176_v2 = vld [vmem:[%s1523_s7 + $0x18] sm:$0xff] }
  0x1b   :  { %474 = vmatpush.bf16.msra.mxu1 %v1117_v25  ;;  %v1170_v25 = vld [vmem:[%s1521_s5 + $0x28] sm:$0xff]  ;;  %v1175_v3 = vld [vmem:[%s1523_s7 + $0x10] sm:$0xff] }
  0x1c   :  { %488 = vmatpush.bf16.msra.mxu2 %v1125_v26 }
  0x1d   :  { %502 = vmatpush.bf16.msra.mxu3 %v1133_v27 }
  0x1e   :  { %461 = vmatpush.bf16.msra.mxu0 %v1108_v28 }
  0x1f   :  { %475 = vmatpush.bf16.msra.mxu1 %v1116_v29  ;;  %v1169_v29 = vld [vmem:[%s1521_s5 + $0x20] sm:$0xff] }
  0x20   :  { %489 = vmatpush.bf16.msra.mxu2 %v1124_v36 }
  0x21   :  { %503 = vmatpush.bf16.msra.mxu3 %v1132_v37  ;;  %462 = vmatmul.bf16.vlgmr.msra.gmra.mxu0 %v47_v40 }
  0x22   :  { %510 = vmatpush.bf16.msrb.mxu0 %v1147_v34  ;;  %476 = vmatmul.bf16.vlgmr.msra.gmra.mxu1 %v48_v43 }
  0x23   :  { %524 = vmatpush.bf16.msrb.mxu1 %v1155_v35  ;;  %490 = vmatmul.bf16.vlgmr.msra.gmra.mxu2 %v49_v47 }
  0x24   :  { %545 = vmatpush.bf16.msrb.mxu2 %v1156_v44  ;;  %504 = vmatmul.bf16.vlgmr.msra.gmra.mxu3 %v50_v48 }
  0x25   :  { %623 = vmatpush.bf16.msrb.mxu3 %v1164_v6 }
  0x26   :  { %511 = vmatpush.bf16.msrb.mxu0 %v1146_v45 }
  0x27   :  { %525 = vmatpush.bf16.msrb.mxu1 %v1154_v46 }
  0x28   :  { %708 = vmatpush.bf16.msra.mxu2 %v1172_v18 }
  0x29   :  { %624 = vmatpush.bf16.msrb.mxu3 %v1163_v7  ;;  %v1188_v7 = vld [vmem:[%s1522_s6] ss:$0 sm:$0xff] }
  0x2a   :  { %512 = vmatpush.bf16.msrb.mxu0 %v1145_v49 }
  0x2b   :  { %526 = vmatpush.bf16.msrb.mxu1 %v1153_v50  ;;  %v1168_v50 = vld [vmem:[%s1521_s5 + $0x18] sm:$0xff] }
  0x2c   :  { %709 = vmatpush.bf16.msra.mxu2 %v1171_v20 }
  0x2d   :  { %625 = vmatpush.bf16.msrb.mxu3 %v1162_v8 }
  0x2e   :  { %513 = vmatpush.bf16.msrb.mxu0 %v1144_v51  ;;  %v1167_v51 = vld [vmem:[%s1521_s5 + $0x10] sm:$0xff] }
  0x2f   :  { %527 = vmatpush.bf16.msrb.mxu1 %v1152_v52  ;;  %v1166_v52 = vld [vmem:[%s1521_s5 + $0x8] sm:$0xff] }
  0x30   :  { %710 = vmatpush.bf16.msra.mxu2 %v1170_v25 }
  0x31   :  { %626 = vmatpush.bf16.msrb.mxu3 %v1161_v9 }
  0x32   :  { %514 = vmatpush.bf16.msrb.mxu0 %v1143_v53  ;;  %v1165_v53 = vld [vmem:[%s1521_s5] sm:$0xff] }
  0x33   :  { %528 = vmatpush.bf16.msrb.mxu1 %v1151_v54  ;;  %1011 = vmatmul.msk.bf16.vlgmr.msrb.gmra.mxu2 %vm450_vm0, %v53_v59  ;;  %v1180_v54 = vld [vmem:[%s1523_s7 + $0x38] sm:$0xff]  ;;  %v1187_v59 = vld [vmem:[%s1519_s4] ss:$0 sm:$0xff] }
  0x34   :  { %711 = vmatpush.bf16.msra.mxu2 %v1169_v29 }
  0x35   :  { %627 = vmatpush.bf16.msrb.mxu3 %v1160_v10 }
  0x36   :  { %515 = vmatpush.bf16.msrb.mxu0 %v1142_v57  ;;  %v1177_v57 = vld [vmem:[%s1523_s7 + $0x20] sm:$0xff] }
  0x37   :  { %529 = vmatpush.bf16.msrb.mxu1 %v1150_v58 }
  0x38   :  { %712 = vmatpush.bf16.msra.mxu2 %v1168_v50 }
  0x39   :  { %628 = vmatpush.bf16.msrb.mxu3 %v1159_v11 }
  0x3a   :  { %516 = vmatpush.bf16.msrb.mxu0 %v1141_v60 }
  0x3b   :  { %530 = vmatpush.bf16.msrb.mxu1 %v1149_v61 }
  0x3c   :  { %713 = vmatpush.bf16.msra.mxu2 %v1167_v51 }
  0x3d   :  { %629 = vmatpush.bf16.msrb.mxu3 %v1158_v12 }
  0x3e   :  { %517 = vmatpush.bf16.msrb.mxu0 %v1140_v62 }
  0x3f   :  { %531 = vmatpush.bf16.msrb.mxu1 %v1148_v63 }
  0x40   :  { %714 = vmatpush.bf16.msra.mxu2 %v1166_v52 }
  0x41   :  { %518 = vmatmul.bf16.vlgmr.msrb.gmra.mxu0 %v51_v4  ;;  %630 = vmatpush.bf16.msrb.mxu3 %v1157_v16  ;;  %v1174_v4 = vld [vmem:[%s1523_s7 + $0x8] sm:$0xff] }
  0x42   :  { %532 = vmatmul.bf16.vlgmr.msrb.gmra.mxu1 %v52_v5  ;;  %793 = vmatpush.bf16.msra.mxu0 %v1180_v54  ;;  %v1173_v5 = vld [vmem:[%s1523_s7] sm:$0xff] }
  0x44   :  { %715 = vmatpush.bf16.msra.mxu2 %v1165_v53 }
  0x46   :  { %794 = vmatpush.bf16.msra.mxu0 %v1179_v55 }
  0x4a   :  { %795 = vmatpush.bf16.msra.mxu0 %v1178_v56 }
  0x4e   :  { %796 = vmatpush.bf16.msra.mxu0 %v1177_v57 }
  0x52   :  { %797 = vmatpush.bf16.msra.mxu0 %v1176_v2 }
  0x56   :  { %798 = vmatpush.bf16.msra.mxu0 %v1175_v3 }
  0x5a   :  { %799 = vmatpush.bf16.msra.mxu0 %v1174_v4 }
  0x5e   :  { %800 = vmatpush.bf16.msra.mxu0 %v1173_v5 }
  0x9e   :  { %v463_v13 = vpop.f32.mrf.mxu0 }
  0x9f   :  { %v477_v14 = vpop.f32.mrf.mxu1  ;;  %v464_v19 = vadd.f32 %v1186_v17, %v463_v13 }
  0xa1   :  { %v478_v24 = vadd.f32 %v477_v14, %v464_v19 }
  0xa6   :  { %v491_v15 = vpop.f32.mrf.mxu2  ;;  %v465_v21 = vpop.f32.mrf.mxu0 }
  0xa7   :  { %v479_v22 = vpop.f32.mrf.mxu1  ;;  %v505_v26 = vpop.f32.mrf.mxu3  ;;  %v466_v27 = vadd.f32 %v1186_v17, %v465_v21  ;;  %v492_v28 = vadd.f32 %v491_v15, %v478_v24  ;;  %v1189_v15 = vld [vmem:[%s1524_s8] ss:$0 sm:$0xff] }
  0xa9   :  { %v480_v30 = vadd.f32 %v479_v22, %v466_v27  ;;  %v506_v33 = vadd.f32 %v505_v26, %v492_v28 }
  0xae   :  { %v493_v23 = vpop.f32.mrf.mxu2 }
  0xaf   :  { %v494_v35 = vadd.f32 %v493_v23, %v480_v30  ;;  %v507_v37 = vpop.f32.mrf.mxu3 }
  0xb1   :  { %v508_v38 = vadd.f32 %v507_v37, %v494_v35 }
  0xb6   :  { %v547_v34 = vpop.f32.mrf.mxu2 }
  0xbe   :  { %v519_v31 = vpop.f32.mrf.mxu0  ;;  %v549_v45 = vpop.f32.mrf.mxu2 }
  0xbf   :  { %v533_v32 = vpop.f32.mrf.mxu1  ;;  %v520_v36 = vadd.f32 %v519_v31, %v506_v33 }
  0xc1   :  { %v534_v39 = vadd.f32 %v533_v32, %v520_v36 }
  0xc3   :  { %v548_v43 = vadd.f32 %v547_v34, %v534_v39 }
  0xc5   :  { %v552_v47 = vmax.f32 %v548_v43, 0.0 }
  0xc6   :  { %v521_v40 = vpop.f32.mrf.mxu0 }
  0xc7   :  { %v522_v41 = vadd.f32 %v521_v40, %v508_v38  ;;  %v535_v42 = vpop.f32.mrf.mxu1 }
  0xc9   :  { %v536_v44 = vadd.f32 %v535_v42, %v522_v41 }
  0xcb   :  { %v550_v46 = vadd.f32 %v549_v45, %v536_v44 }
  0xcd   :  { %v553_v48 = vmax.f32 %v550_v46, 0.0 }
  0xcf   :  { %v554_v49 = vpack.c.bf16 %v553_v48, %v552_v47 }
  0xd1   :  { %631 = vmatmul.bf16.vlgmr.msrb.gmra.mxu3 %v554_v49 }
 0x154   :  { %v632_v58 = vpop.f32.mrf.mxu3 }
 0x155   :  { %v633_v60 = vadd.f32 %v1187_v59, %v632_v58 }
 0x157   :  { %v637_v63 = vmax.f32 %v633_v60, 0.0 }
 0x15c   :  { %v634_v61 = vpop.f32.mrf.mxu3 }
 0x15d   :  { %v635_v62 = vadd.f32 %v1187_v59, %v634_v61 }
 0x15f   :  { %v638_v0 = vmax.f32 %v635_v62, 0.0 }
 0x161   :  { %v639_v1 = vpack.c.bf16 %v638_v0, %v637_v63 }
 0x163   :  { %716 = vmatmul.bf16.vlgmr.msra.gmra.mxu2 %v639_v1 }
 0x1e6   :  { %v717_v6 = vpop.f32.mrf.mxu2 }
 0x1e7   :  { %v718_v8 = vadd.f32 %v1188_v7, %v717_v6 }
 0x1e9   :  { %v722_v11 = vmax.f32 %v718_v8, 0.0 }
 0x1ee   :  { %v719_v9 = vpop.f32.mrf.mxu2 }
 0x1ef   :  { %v720_v10 = vadd.f32 %v1188_v7, %v719_v9 }
 0x1f1   :  { %v723_v12 = vmax.f32 %v720_v10, 0.0 }
 0x1f3   :  { %v724_v13 = vpack.c.bf16 %v723_v12, %v722_v11 }
 0x1f5   :  { %801 = vmatmul.bf16.vlgmr.msra.gmra.mxu0 %v724_v13 }
 0x272   :  { %v802_v14 = vpop.f32.mrf.mxu0 }
 0x273   :  { %v803_v17 = vadd.f32 %v1189_v15, %v802_v14 }
 0x27a   :  { %v804_v16 = vpop.f32.mrf.mxu0 }
 0x27b   :  { %v805_v18 = vadd.f32 %v1189_v15, %v804_v16 }
 0x27d   :  { %v1184_v19 = vpack.c.bf16 %v805_v18, %v803_v17 }
 0x27f   :  { %1185 = vst [vmem:[%s1525_s9] sm:$0xff] %v1184_v19  }

</bundles_post_ra>
